<compile_context>
chip_gen: v7x
topology: tpu7x:2x2x1
jax: 0.10.0
libtpu: 0.0.40
codegen_flags: <defaults>
</compile_context>

<pallas_src>
import functools
import math

import jax
import jax.numpy as jnp
from jax.experimental import pallas as pl
from jax.experimental.pallas import tpu as pltpu


def _round_up(x, m):
    return ((x + m - 1) // m) * m


def _ce_kernel(logits_ref, labels_ref, loss_ref, asum_ref, acnt_ref, *,
               ignore_lb, thresh_val, s_total, tile_s):
    """Per-pixel CE (ignore_index, reduction='none') + fused OHEM partials.

    logits_ref: (1, C, TS)  -- classes on sublanes, pixels on lanes
    labels_ref: (1, 1, TS)  int32
    loss_ref  : (1, 1, TS)  f32
    asum_ref/acnt_ref: (1, 1, 8, 128) f32 per-block partial statistics
    """
    x = logits_ref[0].astype(jnp.float32)                    # (C, TS)
    lab = labels_ref[0]                                       # (1, TS)

    # numerically stable log-sum-exp over the class (sublane) axis
    m = jnp.max(x, axis=0, keepdims=True)                     # (1, TS)
    lse = m + jnp.log(jnp.sum(jnp.exp(x - m), axis=0, keepdims=True))

    # gather logits[label] via a class-iota compare (no dynamic gather on TPU)
    cls = jax.lax.broadcasted_iota(jnp.int32, x.shape, 0)     # (C, TS)
    picked = jnp.sum(jnp.where(cls == lab, x, 0.0), axis=0, keepdims=True)

    loss = lse - picked                                        # -log_softmax[label]
    loss = jnp.where(lab == ignore_lb, jnp.zeros_like(loss), loss)
    loss_ref[0] = loss

    # fused above-threshold partial statistics (mask out padded lanes)
    lane = jax.lax.broadcasted_iota(jnp.int32, (1, tile_s), 1)
    valid = (pl.program_id(1) * tile_s + lane) < s_total
    above = jnp.logical_and(loss > thresh_val, valid)
    asum = jnp.sum(jnp.where(above, loss, 0.0))
    acnt = jnp.sum(above.astype(jnp.float32))
    asum_ref[...] = jnp.full(asum_ref.shape, asum, dtype=jnp.float32)
    acnt_ref[...] = jnp.full(acnt_ref.shape, acnt, dtype=jnp.float32)


def per_pixel_ce(logits_nchw, labels_nhw, *, thresh_val, ignore_lb=255,
                 max_tile_s=8192):
    """Returns (per-pixel loss (N*H*W,), sum(loss>thresh), count(loss>thresh))."""
    N, C, H, W = logits_nchw.shape
    S = H * W

    # free reshapes only (row-major merge of H,W) -- no transpose
    logits_r = logits_nchw.reshape(N, C, S)
    labels_r = labels_nhw.reshape(N, 1, S).astype(jnp.int32)

    # lane-dense spatial tiling: pad S to a multiple of 128 if needed and pick
    # the largest lane tile (<= max_tile_s) that divides it.
    s_pad = _round_up(S, 128)
    tile_s = 128
    for t in (8192, 4096, 2048, 1024, 512, 256, 128):
        if t <= max_tile_s and s_pad % t == 0:
            tile_s = t
            break
    if s_pad != S:
        # padded pixels get the ignore label -> loss 0 and are masked out of
        # the fused above-threshold statistics inside the kernel.
        logits_r = jnp.pad(logits_r, ((0, 0), (0, 0), (0, s_pad - S)))
        labels_r = jnp.pad(labels_r, ((0, 0), (0, 0), (0, s_pad - S)),
                           constant_values=ignore_lb)
    num_s = s_pad // tile_s

    kernel = functools.partial(_ce_kernel, ignore_lb=ignore_lb,
                               thresh_val=thresh_val, s_total=S, tile_s=tile_s)
    loss_r, asum_b, acnt_b = pl.pallas_call(
        kernel,
        out_shape=(
            jax.ShapeDtypeStruct((N, 1, s_pad), jnp.float32),
            jax.ShapeDtypeStruct((N, num_s, 8, 128), jnp.float32),
            jax.ShapeDtypeStruct((N, num_s, 8, 128), jnp.float32),
        ),
        grid_spec=pltpu.PrefetchScalarGridSpec(
            num_scalar_prefetch=0,
            grid=(N, num_s),
            in_specs=[
                pl.BlockSpec((1, C, tile_s), lambda n, s: (n, 0, s)),
                pl.BlockSpec((1, 1, tile_s), lambda n, s: (n, 0, s)),
            ],
            out_specs=[
                pl.BlockSpec((1, 1, tile_s), lambda n, s: (n, 0, s)),
                pl.BlockSpec((1, 1, 8, 128), lambda n, s: (n, s, 0, 0)),
                pl.BlockSpec((1, 1, 8, 128), lambda n, s: (n, s, 0, 0)),
            ],
        ),
        compiler_params=pltpu.CompilerParams(
            dimension_semantics=("parallel", "parallel")),
    )(logits_r, labels_r)

    loss_flat = loss_r[:, 0, :S].reshape(N * S)
    above_sum = jnp.sum(asum_b[:, :, 0, 0])
    # per-block counts are small exact f32 integers; sum them as int32
    above_cnt = jnp.sum(acnt_b[:, :, 0, 0].astype(jnp.int32))
    return loss_flat, above_sum, above_cnt


def ohem_ce_loss(logits_nchw, labels_nhw, *, thresh, n_min, ignore_lb=255):
    """Matches OhemCELoss.forward semantics."""
    thresh_val = float(-math.log(thresh))
    loss, above_sum, above_cnt = per_pixel_ce(
        logits_nchw, labels_nhw, thresh_val=thresh_val, ignore_lb=ignore_lb)

    # sorted_desc[n_min] > thresh  <=>  count(loss > thresh) > n_min
    cond = above_cnt > n_min
    mean_above = above_sum / jnp.maximum(above_cnt.astype(jnp.float32), 1.0)

    # TODO(synk): descending top-k selection (torch.sort) has no clean Pallas
    # TPU equivalent; done with jax.lax.top_k in plain JAX (much cheaper than
    # the previous full jnp.sort over all pixels).
    topk_vals, _ = jax.lax.top_k(loss, n_min)
    mean_topk = jnp.mean(topk_vals)

    return jnp.where(cond, mean_above, mean_topk)


if __name__ == "__main__":
    key = jax.random.PRNGKey(0)
    k1, k2, k3 = jax.random.split(key, 3)

    N, C, H, W = 2, 4, 16, 16          # small NCHW shapes
    logits = jax.random.normal(k1, (N, C, H, W), dtype=jnp.float32)
    labels = jax.random.randint(k2, (N, H, W), 0, C, dtype=jnp.int32)
    # sprinkle some ignore labels (255)
    ignore_mask = jax.random.uniform(k3, (N, H, W)) < 0.1
    labels = jnp.where(ignore_mask, 255, labels)

    thresh = 0.7
    n_min = (N * H * W) // 16          # 32

    fwd = jax.jit(functools.partial(ohem_ce_loss, thresh=thresh, n_min=n_min,
                                    ignore_lb=255))
    out = fwd(logits, labels)
    jax.block_until_ready(out)
    assert out.shape == () and bool(jnp.isfinite(out))
    print("KERNEL_OK")
</pallas_src>

<mosaic_0001>
module attributes {stable_mosaic.version = 11 : i64} {
  func.func @_ce_kernel(%arg0: i32, %arg1: i32, %arg2: memref<1x4x256xf32, #tpu.memory_space<vmem>>, %arg3: memref<1x1x256xi32, #tpu.memory_space<vmem>>, %arg4: memref<1x1x256xf32, #tpu.memory_space<vmem>>, %arg5: memref<1x1x8x128xf32, #tpu.memory_space<vmem>>, %arg6: memref<1x1x8x128xf32, #tpu.memory_space<vmem>>) attributes {dimension_semantics = [#tpu.dimension_semantics<parallel>, #tpu.dimension_semantics<parallel>], iteration_bounds = array<i64: 2, 1>, scalar_prefetch = 0 : i64, scratch_operands = 0 : i64, tpu.core_type = #tpu.core_type<tc>, window_params = [{transform_indices = @transform_0, window_bounds = array<i64: 1, 4, 256>}, {transform_indices = @transform_1, window_bounds = array<i64: 1, 1, 256>}, {transform_indices = @transform_2, window_bounds = array<i64: 1, 1, 256>}, {transform_indices = @transform_3, window_bounds = array<i64: 1, 1, 8, 128>}, {transform_indices = @transform_4, window_bounds = array<i64: 1, 1, 8, 128>}]} {
    %c0 = arith.constant 0 : index
    %c0_0 = arith.constant 0 : index
    %c0_1 = arith.constant 0 : index
    %0 = vector.load %arg2[%c0, %c0_0, %c0_1] : memref<1x4x256xf32, #tpu.memory_space<vmem>>, vector<1x4x256xf32>
    %1 = vector.shape_cast %0 : vector<1x4x256xf32> to vector<4x256xf32>
    %c0_2 = arith.constant 0 : index
    %c0_3 = arith.constant 0 : index
    %c0_4 = arith.constant 0 : index
    %2 = vector.load %arg3[%c0_2, %c0_3, %c0_4] : memref<1x1x256xi32, #tpu.memory_space<vmem>>, vector<1x1x256xi32>
    %3 = vector.shape_cast %2 : vector<1x1x256xi32> to vector<1x256xi32>
    %cst = arith.constant dense<0xFF800000> : vector<256xf32>
    %4 = vector.multi_reduction <maximumf>, %1, %cst [0] : vector<4x256xf32> to vector<256xf32>
    %5 = vector.shape_cast %4 : vector<256xf32> to vector<1x256xf32>
    %6 = vector.broadcast %5 : vector<1x256xf32> to vector<4x256xf32>
    %7 = arith.subf %1, %6 : vector<4x256xf32>
    %8 = math.exp %7 : vector<4x256xf32>
    %cst_5 = arith.constant dense<0.000000e+00> : vector<256xf32>
    %9 = vector.multi_reduction <add>, %8, %cst_5 [0] : vector<4x256xf32> to vector<256xf32>
    %10 = vector.shape_cast %9 : vector<256xf32> to vector<1x256xf32>
    %11 = math.log %10 : vector<1x256xf32>
    %12 = arith.addf %5, %11 : vector<1x256xf32>
    %13 = tpu.iota {dimensions = array<i32: 0>} : vector<4x256xi32>
    %14 = vector.broadcast %3 : vector<1x256xi32> to vector<4x256xi32>
    %15 = arith.cmpi eq, %13, %14 : vector<4x256xi32>
    %cst_6 = arith.constant 0.000000e+00 : f32
    %16 = vector.broadcast %cst_6 : f32 to vector<4x256xf32>
    %17 = arith.select %15, %1, %16 : vector<4x256xi1>, vector<4x256xf32>
    %cst_7 = arith.constant dense<0.000000e+00> : vector<256xf32>
    %18 = vector.multi_reduction <add>, %17, %cst_7 [0] : vector<4x256xf32> to vector<256xf32>
    %19 = vector.shape_cast %18 : vector<256xf32> to vector<1x256xf32>
    %20 = arith.subf %12, %19 : vector<1x256xf32>
    %c255_i32 = arith.constant 255 : i32
    %21 = vector.broadcast %c255_i32 : i32 to vector<1x256xi32>
    %22 = arith.cmpi eq, %3, %21 : vector<1x256xi32>
    %cst_8 = arith.constant 0.000000e+00 : f32
    %23 = vector.broadcast %cst_8 : f32 to vector<1x256xf32>
    %24 = arith.select %22, %23, %20 : vector<1x256xi1>, vector<1x256xf32>
    %c0_9 = arith.constant 0 : index
    %c0_10 = arith.constant 0 : index
    %c0_11 = arith.constant 0 : index
    %25 = vector.load %arg4[%c0_9, %c0_10, %c0_11] : memref<1x1x256xf32, #tpu.memory_space<vmem>>, vector<1x1x256xf32>
    %26 = vector.shape_cast %25 : vector<1x1x256xf32> to vector<1x256xf32>
    %27 = vector.shape_cast %24 : vector<1x256xf32> to vector<1x1x256xf32>
    tpu.vector_store %arg4[%c0_9, %c0_10, %c0_11], %27 {strides = array<i32>} : memref<1x1x256xf32, #tpu.memory_space<vmem>>, vector<1x1x256xf32>,
    %28 = tpu.iota {dimensions = array<i32: 1>} : vector<1x256xi32>
    %c256_i32 = arith.constant 256 : i32
    %29 = arith.muli %arg1, %c256_i32 : i32
    %30 = vector.broadcast %29 : i32 to vector<1x256xi32>
    %31 = arith.addi %30, %28 : vector<1x256xi32>
    %c256_i32_12 = arith.constant 256 : i32
    %32 = vector.broadcast %c256_i32_12 : i32 to vector<1x256xi32>
    %33 = arith.cmpi slt, %31, %32 : vector<1x256xi32>
    %cst_13 = arith.constant 0.356674939 : f32
    %34 = vector.broadcast %cst_13 : f32 to vector<1x256xf32>
    %35 = arith.cmpf ogt, %24, %34 : vector<1x256xf32>
    %36 = arith.andi %35, %33 : vector<1x256xi1>
    %cst_14 = arith.constant 0.000000e+00 : f32
    %37 = vector.broadcast %cst_14 : f32 to vector<1x256xf32>
    %38 = arith.select %36, %24, %37 : vector<1x256xi1>, vector<1x256xf32>
    %39 = vector.shape_cast %38 : vector<1x256xf32> to vector<1x1x256xf32>
    %cst_15 = arith.constant dense<0.000000e+00> : vector<1xf32>
    %40 = vector.multi_reduction <add>, %39, %cst_15 [1, 2] : vector<1x1x256xf32> to vector<1xf32>
    %41 = vector.shape_cast %40 : vector<1xf32> to vector<1x1x1xf32>
    %42 = vector.extract %41[0, 0, 0] : f32 from vector<1x1x1xf32>
    %43 = arith.extui %36 : vector<1x256xi1> to vector<1x256xi32>
    %44 = arith.sitofp %43 : vector<1x256xi32> to vector<1x256xf32>
    %45 = vector.shape_cast %44 : vector<1x256xf32> to vector<1x1x256xf32>
    %cst_16 = arith.constant dense<0.000000e+00> : vector<1xf32>
    %46 = vector.multi_reduction <add>, %45, %cst_16 [1, 2] : vector<1x1x256xf32> to vector<1xf32>
    %47 = vector.shape_cast %46 : vector<1xf32> to vector<1x1x1xf32>
    %48 = vector.extract %47[0, 0, 0] : f32 from vector<1x1x1xf32>
    %49 = vector.broadcast %42 : f32 to vector<1x1x8x128xf32>
    %c0_17 = arith.constant 0 : index
    %c0_18 = arith.constant 0 : index
    %c0_19 = arith.constant 0 : index
    %c0_20 = arith.constant 0 : index
    %50 = vector.load %arg5[%c0_17, %c0_18, %c0_19, %c0_20] : memref<1x1x8x128xf32, #tpu.memory_space<vmem>>, vector<1x1x8x128xf32>
    tpu.vector_store %arg5[%c0_17, %c0_18, %c0_19, %c0_20], %49 {strides = array<i32>} : memref<1x1x8x128xf32, #tpu.memory_space<vmem>>, vector<1x1x8x128xf32>,
    %51 = vector.broadcast %48 : f32 to vector<1x1x8x128xf32>
    %c0_21 = arith.constant 0 : index
    %c0_22 = arith.constant 0 : index
    %c0_23 = arith.constant 0 : index
    %c0_24 = arith.constant 0 : index
    %52 = vector.load %arg6[%c0_21, %c0_22, %c0_23, %c0_24] : memref<1x1x8x128xf32, #tpu.memory_space<vmem>>, vector<1x1x8x128xf32>
    tpu.vector_store %arg6[%c0_21, %c0_22, %c0_23, %c0_24], %51 {strides = array<i32>} : memref<1x1x8x128xf32, #tpu.memory_space<vmem>>, vector<1x1x8x128xf32>,
    return
  }
  func.func @transform_0(%arg0: i32, %arg1: i32) -> (i32, i32, i32) {
    %c0_i32 = arith.constant 0 : i32
    %c0_i32_0 = arith.constant 0 : i32
    return %arg0, %c0_i32, %arg1 : i32, i32, i32
  }
  func.func @transform_1(%arg0: i32, %arg1: i32) -> (i32, i32, i32) {
    %c0_i32 = arith.constant 0 : i32
    %c0_i32_0 = arith.constant 0 : i32
    return %arg0, %c0_i32, %arg1 : i32, i32, i32
  }
  func.func @transform_2(%arg0: i32, %arg1: i32) -> (i32, i32, i32) {
    %c0_i32 = arith.constant 0 : i32
    %c0_i32_0 = arith.constant 0 : i32
    return %arg0, %c0_i32, %arg1 : i32, i32, i32
  }
  func.func @transform_3(%arg0: i32, %arg1: i32) -> (i32, i32, i32, i32) {
    %c0_i32 = arith.constant 0 : i32
    %c0_i32_0 = arith.constant 0 : i32
    %c0_i32_1 = arith.constant 0 : i32
    return %arg0, %arg1, %c0_i32, %c0_i32_0 : i32, i32, i32, i32
  }
  func.func @transform_4(%arg0: i32, %arg1: i32) -> (i32, i32, i32, i32) {
    %c0_i32 = arith.constant 0 : i32
    %c0_i32_0 = arith.constant 0 : i32
    %c0_i32_1 = arith.constant 0 : i32
    return %arg0, %arg1, %c0_i32, %c0_i32_0 : i32, i32, i32, i32
  }
}

</mosaic_0001>

<bundles_post_ra>
// kernel: ohem_ce_loss.1
= control target key start
LH: loop header
LB: loop body
LE: loop exit
PB: predicated region body
PF: predicated region fallthrough
CT: control target
= control target key end

     0   :  { %s776_s15 = smov 0   ;;  %s778_s16 = smov 0   ;;  %s854_s0 = inlined_call_operand.vmem [shape: f32[2,4,256], index: 0, kind: input, shape index: {}]   ;;  %s855_s1 = inlined_call_operand.vmem [shape: s32[2,1,256], index: 1, kind: input, shape index: {}]   ;;  %s856_s2 = inlined_call_operand.vmem [shape: f32[2,1,256], index: 2, kind: output, shape index: {0}]   ;;  %s857_s3 = inlined_call_operand.vmem [shape: f32[2,1,8,128], index: 3, kind: output, shape index: {1}]   ;;  %s858_s4 = inlined_call_operand.vmem [shape: f32[2,1,8,128], index: 4, kind: output, shape index: {2}]  }
   0x1   :  { %s780_s17 = smov 0  }
   0x2 LB: > { %s27_s18 = sadd.s32 1, %s742_s16  ;;  %p675_p0 = scmp.ge.s32.totalorder %s746_s17, 1  ;;  %s746_s17 = sphi %s780_s17, %s15_s17   ;;  %s742_s16 = sphi %s778_s16, %s860_s16   ;;  %s738_s15 = sphi %s776_s15, %s859_s15  }
   0x3   : > { %p29_p1 = scmp.ge.s32.totalorder %s27_s18, 2  ;;  %p208_p2 = scmp.lt.s32.totalorder %s746_s17, 3 }
   0x5   : > { %s862_s18 = smov (%p29_p1, %s27_s18), 0  ;;  %p209_p3 = pnand %p675_p0, %p208_p2 }
   0x6   : > { %p264_p4 = scmp.lt.s32.totalorder (!%p209_p3), %s738_s15, 1  ;;  %vm310_vm0 = vcmask (!%p209_p3), 1043456   ;;  %v355_v15 = vlaneseq (!%p209_p3)  ;;  %v748_v53 = vmov (!%p209_p3), 1966171168   ;;  %vm451_vm8 = vcmask (!%p209_p3), 1040384  }
   0x7   : > { %212 = sbr.rel (%p209_p3) target bundleno = 307 (0x133), region = 28  ;;  %v390_v54 = vunpack.c.l.s4 (!%p209_p3), %v748_v53 }
   0x8   : > { %v356_v18 = vshrl.u32 (!%p209_p3), %v355_v15, 7  ;;  %vm407_vm4 = vcmp.lt.s32.totalorder (!%p209_p3), %v355_v15, 256 }
   0x9   : > { %v391_v57 = vunpack.c.0.s8 (!%p209_p3), %v390_v54 }
   0xa   : > { %v812_v21 = vsub.s32 (!%p209_p3), 0, %v356_v18  ;;  %v816_v23 = vsub.s32 (!%p209_p3), 1, %v356_v18 }
   0xb   : > { %v394_v63 = vsub.s32 (!%p209_p3), %v391_v57, %v356_v18 }
   0xe   : > { %s864_s15 = smov (!%p264_p4, %s738_s15), 1 }
   0xf   : > { %s797_s19 = sshll.u32 %s864_s15, 3  ;;  %s678_s23 = sshll.u32 %s864_s15, 1 }
  0x10   : > { %s271_s22 = scalar_lea.vmem %s854_s0, %s797_s19  ;;  %s280_s26 = scalar_lea.vmem %s855_s1, %s678_s23 }
  0x11   : > { %v305_v0 = vld [vmem:[%s271_s22] sm:$0xff]  ;;  %s289_s29 = scalar_lea.vmem %s856_s2, %s678_s23  ;;  %s297_s6 = scalar_lea.vmem %s857_s3, %s797_s19 }
  0x12   : > { %v308_v1 = vcombine.high %v305_v0, %v305_v0  ;;  %v311_v2 = vsel %vm310_vm0, %v305_v0, -inf  ;;  %v814_v22 = vld [vmem:[%s280_s26] sm:$0x3]  ;;  %s304_s10 = scalar_lea.vmem %s858_s4, %s797_s19 }
  0x13   : > { %v312_v3 = vrot.slane %v311_v2, 4  ;;  %v360_v24 = vrot.slane %v814_v22, %v812_v21  ;;  %v364_v25 = vrot.slane %v814_v22, %v816_v23  ;;  %vm385_vm3 = vcmp.eq.s32.totalorder %v814_v22, 255 }
  0x14   : > { %v318_v4 = vsel %vm310_vm0, %v308_v1, -inf }
  0x15   : > { %v313_v5 = vmax.f32 %v311_v2, %v312_v3  ;;  %v319_v6 = vrot.slane %v318_v4, 4  ;;  %vm365_vm1 = vcmp.eq.s32.totalorder %v356_v18, %v360_v24  ;;  %vm366_vm2 = vcmp.eq.s32.totalorder %v356_v18, %v364_v25 }
  0x16   : > { %v367_v26 = vsel %vm365_vm1, %v305_v0, 0.0  ;;  %v368_v30 = vsel %vm366_vm2, %v308_v1, 0.0 }
  0x17   : > { %v314_v7 = vrot.slane %v313_v5, 2  ;;  %v320_v8 = vmax.f32 %v318_v4, %v319_v6  ;;  %v369_v32 = vsel %vm310_vm0, %v367_v26, 0.0  ;;  %v376_v36 = vsel %vm310_vm0, %v368_v30, 0.0 }
  0x18   : > { %v370_v37 = vrot.slane %v369_v32, 4  ;;  %v377_v40 = vrot.slane %v376_v36, 4 }
  0x19   : > { %v315_v9 = vmax.f32 %v313_v5, %v314_v7  ;;  %v321_v10 = vrot.slane %v320_v8, 2 }
  0x1a   : > { %v371_v43 = vadd.f32 %v370_v37, %v369_v32  ;;  %v378_v46 = vadd.f32 %v377_v40, %v376_v36 }
  0x1b   : > { %v316_v11 = vrot.slane %v315_v9, 1  ;;  %v322_v12 = vmax.f32 %v320_v8, %v321_v10 }
  0x1c   : > { %v372_v49 = vrot.slane %v371_v43, 2  ;;  %v379_v51 = vrot.slane %v378_v46, 2 }
  0x1d   : > { %v317_v13 = vmax.f32 %v315_v9, %v316_v11  ;;  %v323_v14 = vrot.slane %v322_v12, 1 }
  0x1e   : > { %v373_v52 = vadd.f32 %v372_v49, %v371_v43  ;;  %v380_v55 = vadd.f32 %v379_v51, %v378_v46 }
  0x1f   : > { %v324_v16 = vmax.f32 %v322_v12, %v323_v14 }
  0x20   : > { %v374_v56 = vrot.slane %v373_v52, 1  ;;  %v381_v58 = vrot.slane %v380_v55, 1 }
  0x21   : > { %v327_v17 = vcombine.low %v317_v13, %v324_v16 }
  0x22   : > { %v375_v61 = vadd.f32 %v374_v56, %v373_v52  ;;  %v382_v4 = vadd.f32 %v381_v58, %v380_v55 }
  0x23   : > { %v329_v19 = vsub.f32 %v305_v0, %v327_v17  ;;  %v749_v0 = vmov 1  }
  0x24   : > { %v422_v1 = vcombine.low %v749_v0, %v749_v0 }
  0x25   : > { %v330_v20 = vmul.f32 1.442695, %v329_v19 }
  0x26   : > { %v429_v7 = vrot.slane %v422_v1, %v394_v63 }
  0x27   : > { %718 = vpow2.f32 %v330_v20 }
  0x28   : > { %v436_v10 = vrot.slane %v429_v7, %v394_v63 }
  0x2a   : > { %vm437_vm5 = vcmp.ne.s32.totalorder %v436_v10, 0 }
  0x31   : > { %v719_v27 = vpop.eup %718 }
  0x32   : > { %v333_v28 = vcombine.high %v719_v27, %v719_v27  ;;  %v335_v29 = vsel %vm310_vm0, %v719_v27, 0.0 }
  0x33   : > { %v336_v31 = vrot.slane %v335_v29, 4 }
  0x34   : > { %v342_v33 = vsel %vm310_vm0, %v333_v28, 0.0 }
  0x35   : > { %v337_v34 = vadd.f32 %v336_v31, %v335_v29  ;;  %v343_v35 = vrot.slane %v342_v33, 4 }
  0x37   : > { %v338_v38 = vrot.slane %v337_v34, 2  ;;  %v344_v39 = vadd.f32 %v343_v35, %v342_v33 }
  0x39   : > { %v339_v41 = vadd.f32 %v338_v38, %v337_v34  ;;  %v345_v42 = vrot.slane %v344_v39, 2 }
  0x3b   : > { %v340_v44 = vrot.slane %v339_v41, 1  ;;  %v346_v45 = vadd.f32 %v345_v42, %v344_v39 }
  0x3d   : > { %v341_v47 = vadd.f32 %v340_v44, %v339_v41  ;;  %v347_v48 = vrot.slane %v346_v45, 1 }
  0x3f   : > { %v348_v50 = vadd.f32 %v347_v48, %v346_v45  ;;  %720 = vlog2.f32 %v341_v47 }
  0x41   : > { %722 = vlog2.f32 %v348_v50 }
  0x49   : > { %v721_v59 = vpop.eup %720 }
  0x4a   : > { %v350_v60 = vmul.f32 0.6931472, %v721_v59 }
  0x4b   : > { %v723_v62 = vpop.eup %722 }
  0x4c   : > { %v352_v2 = vmul.f32 0.6931472, %v723_v62  ;;  %v353_v3 = vadd.f32 %v350_v60, %v317_v13 }
  0x4e   : > { %v354_v5 = vadd.f32 %v352_v2, %v324_v16  ;;  %v383_v6 = vsub.f32 %v353_v3, %v375_v61  ;;  %v750_v16 = vmov 0.0  }
  0x50   : > { %v384_v8 = vsub.f32 %v354_v5, %v382_v4 }
  0x52   : > { %v388_v9 = vcombine.low %v383_v6, %v384_v8 }
  0x54   : > { %v395_v11 = vrot.slane %v388_v9, %v394_v63 }
  0x56   : > { %v402_v12 = vrot.slane %v395_v11, %v394_v63 }
  0x58   : > { %v404_v13 = vsel %vm385_vm3, 0.0, %v402_v12 }
  0x59   : > { %vm419_vm6 = vcmp.gt.f32.partialorder %v404_v13, 0.35667494  ;;  %409 = vst.msk [vmem:[%s289_s29] sm:$0x3] %vm407_vm4, %v404_v13 }
  0x5a   : > { %vm438_vm7 = vmand %vm419_vm6, %vm437_vm5 }
  0x5b   : > { %v439_v14 = vsel %vm438_vm7, %v404_v13, 0.0  ;;  %v682_v17 = vsel %vm438_vm7, 1.0, %v750_v16 }
  0x5c   : > { %v444_v18 = vrot.slane %v439_v14, %v812_v21  ;;  %v448_v19 = vrot.slane %v439_v14, %v816_v23  ;;  %v470_v20 = vrot.slane %v682_v17, %v812_v21  ;;  %v474_v22 = vrot.slane %v682_v17, %v816_v23 }
  0x5e   : > { %v452_v24 = vsel %vm451_vm8, %v444_v18, 0.0  ;;  %v453_v25 = vsel %vm451_vm8, %v448_v19, 0.0  ;;  %v477_v15 = vsel %vm451_vm8, %v470_v20, 0.0  ;;  %v478_v26 = vsel %vm451_vm8, %v474_v22, 0.0 }
  0x5f   : > { %v454_v27 = vadd.f32 %v453_v25, %v452_v24  ;;  %v479_v28 = vadd.f32 %v478_v26, %v477_v15 }
  0x61   : > { %455 = vadd.xlane.f32.xlu0 %v454_v27 }
  0x65   : > { %480 = vadd.xlane.f32.xlu0 %v479_v28 }
  0xee   : > { %v456_v29 = vpop.xlane.xlu0 %455 }
  0xef   : > { %v457_v30 = vrot.slane %v456_v29, 4 }
  0xf1   : > { %v458_v31 = vadd.f32 %v457_v30, %v456_v29 }
  0xf2   : > { %v481_v32 = vpop.xlane.xlu0 %480 }
  0xf3   : > { %v459_v33 = vrot.slane %v458_v31, 2  ;;  %v482_v34 = vrot.slane %v481_v32, 4 }
  0xf5   : > { %v483_v35 = vadd.f32 %v482_v34, %v481_v32  ;;  %v460_v21 = vadd.f32 %v459_v33, %v458_v31 }
  0xf7   : > { %v484_v36 = vrot.slane %v483_v35, 2  ;;  %v461_v23 = vrot.slane %v460_v21, 1 }
  0xf9   : > { %v485_v37 = vadd.f32 %v484_v36, %v483_v35  ;;  %v462_v38 = vadd.f32 %v461_v23, %v460_v21 }
  0xfb   : > { %686 = vpush %v462_v38  ;;  %v486_v39 = vrot.slane %v485_v37, 1 }
  0xfd   : > { %v487_v40 = vadd.f32 %v486_v39, %v485_v37 }
  0xff   : > { %688 = vpush %v487_v40 }
 0x12c   : > { %s687_s7 = spop %686 }
 0x12d   : > { %v489_v41 = vstv %s687_s7 }
 0x12e   : > { %490 = vst [vmem:[%s297_s6] sm:$0xff] %v489_v41 }
 0x130   : > { %s689_s11 = spop %688 }
 0x131   : > { %v491_v42 = vstv %s689_s11 }
 0x132   : > { %492 = vst [vmem:[%s304_s10] sm:$0xff] %v491_v42 }
 0x133 PF: > { %s15_s17 = sadd.s32 1, %s746_s17   ;;  %s859_s15 = smov %s742_s16 }
 0x134   : > { %p12_p5 = scmp.ge.s32.totalorder %s15_s17, 4   ;;  %s860_s16 = smov %s862_s18 }
 0x136   :  { %14 = sbr.rel (!%p12_p5) target bundleno = 2 (0x2), region = 85 }

</bundles_post_ra>
